<compile_context>
chip_gen: v7x
topology: tpu7x:2x2x1
jax: 0.10.0
libtpu: 0.0.40
codegen_flags: <defaults>
</compile_context>

<pallas_src>
import functools

import jax
import jax.numpy as jnp
from jax.experimental import pallas as pl
from jax.experimental.pallas import tpu as pltpu


# ----------------------------------------------------------------------------
# Pallas kernel: LayerNorm(word_emb + pos_lookup(ids) + type_lookup(ids))
# ----------------------------------------------------------------------------

def _emb_fused_kernel(eps, we_ref, pid_ref, tid_ref, ptab_ref, ttab_ref,
                      g_ref, b_ref, o_ref):
    we = we_ref[...].astype(jnp.float32)          # [tm, H]
    tm = we.shape[0]

    # Position embedding: one-hot(ids) @ pos_table, fully in-VMEM / on-MXU.
    num_pos = ptab_ref.shape[0]
    pids = pid_ref[...]                           # [tm, 1] int32
    pos_iota = jax.lax.broadcasted_iota(jnp.int32, (tm, num_pos), 1)
    pos_onehot = (pids == pos_iota).astype(jnp.float32)          # [tm, P]
    pe = jnp.dot(pos_onehot, ptab_ref[...],
                 preferred_element_type=jnp.float32)             # [tm, H]

    # Token-type embedding: tiny table (type_vocab_size rows) -> select/accum.
    tids = tid_ref[...]                           # [tm, 1] int32
    ttab = ttab_ref[...]                          # [T, H]
    te = jnp.zeros_like(we)
    for t in range(ttab_ref.shape[0]):            # static, tiny trip count
        te = te + (tids == t).astype(jnp.float32) * ttab[t:t + 1, :]

    # LayerNorm over the lane (hidden) axis, f32 math.
    x = we + pe + te
    mean = jnp.mean(x, axis=-1, keepdims=True)
    xc = x - mean
    var = jnp.mean(xc * xc, axis=-1, keepdims=True)
    inv = jax.lax.rsqrt(var + eps)
    o_ref[...] = (xc * inv * g_ref[...] + b_ref[...]).astype(o_ref.dtype)


def fused_text_embeddings(we, pos_ids, tt_ids, pos_table, type_table,
                          gamma, beta, *, eps=1e-12, block_rows=512,
                          out_dtype=jnp.float32):
    """LayerNorm(we + pos_table[pos_ids] + type_table[tt_ids]).

    we:         [M, H] f32 (already-gathered word-embedding rows)
    pos_ids:    [M] int32
    tt_ids:     [M] int32
    pos_table:  [P, H] f32 (kept VMEM-resident)
    type_table: [T, H] f32 (kept VMEM-resident)
    gamma/beta: [1, H] f32
    """
    M, H = we.shape
    P = pos_table.shape[0]
    T = type_table.shape[0]

    # Pad rows to a multiple of 8 so tiles stay 8-sublane aligned (never
    # collapse to one whole-array block). Pad ids with 0 (valid table rows).
    M_pad = ((M + 7) // 8) * 8
    if M_pad != M:
        pad = M_pad - M
        we = jnp.pad(we, ((0, pad), (0, 0)))
        pos_ids = jnp.pad(pos_ids, ((0, pad),))
        tt_ids = jnp.pad(tt_ids, ((0, pad),))

    pid2 = pos_ids.reshape(M_pad, 1).astype(jnp.int32)
    tid2 = tt_ids.reshape(M_pad, 1).astype(jnp.int32)

    tm = max(8, (min(block_rows, M_pad) // 8) * 8)
    grid = (pl.cdiv(M_pad, tm),)

    row_spec = pl.BlockSpec((tm, H), lambda i: (i, 0))
    id_spec = pl.BlockSpec((tm, 1), lambda i: (i, 0))
    ptab_spec = pl.BlockSpec((P, H), lambda i: (0, 0))   # resident, DMA'd once
    ttab_spec = pl.BlockSpec((T, H), lambda i: (0, 0))   # resident, DMA'd once
    vec_spec = pl.BlockSpec((1, H), lambda i: (0, 0))

    kernel = functools.partial(_emb_fused_kernel, eps)
    out = pl.pallas_call(
        kernel,
        out_shape=jax.ShapeDtypeStruct((M_pad, H), out_dtype),
        grid=grid,
        in_specs=[row_spec, id_spec, id_spec, ptab_spec, ttab_spec,
                  vec_spec, vec_spec],
        out_specs=row_spec,
        compiler_params=pltpu.CompilerParams(
            dimension_semantics=("parallel",),
            vmem_limit_bytes=32 * 1024 * 1024),
    )(we, pid2, tid2, pos_table, type_table, gamma, beta)

    if M_pad != M:
        out = out[:M]
    return out


# ----------------------------------------------------------------------------
# Parameters (match UniterTextEmbeddings init: normal(0, initializer_range),
# word embedding padding_idx=0 row zeroed, LayerNorm weight=1 / bias=0)
# ----------------------------------------------------------------------------

def init_text_embedding_params(key, cfg):
    H = cfg["hidden_size"]
    std = cfg["initializer_range"]
    k_w, k_p, k_t = jax.random.split(key, 3)

    word = std * jax.random.normal(k_w, (cfg["vocab_size"], H), jnp.float32)
    word = word.at[0].set(0.0)  # nn.Embedding(..., padding_idx=0)

    return {
        "word_emb": word,
        "pos_emb": std * jax.random.normal(
            k_p, (cfg["max_position_embeddings"], H), jnp.float32),
        "type_emb": std * jax.random.normal(
            k_t, (cfg["type_vocab_size"], H), jnp.float32),
        # Stored pre-reshaped to (1, H): no per-call reshape on the hot path.
        "ln_g": jnp.ones((1, H), jnp.float32),
        "ln_b": jnp.zeros((1, H), jnp.float32),
    }


# ----------------------------------------------------------------------------
# Forward pass (mirrors UniterTextEmbeddings.forward, eval mode)
# ----------------------------------------------------------------------------

def uniter_text_embeddings(params, input_ids, position_ids, token_type_ids=None):
    if token_type_ids is None:
        token_type_ids = jnp.zeros_like(input_ids)
    B, L = input_ids.shape
    H = params["word_emb"].shape[1]

    # Word-embedding gather stays on XLA: the vocab table is too large for
    # VMEM residency and the access is irregular.
    # TODO(synk): fuse the word gather via manual per-row DMA (pl.ANY +
    # scalar-prefetched ids + make_async_copy double-buffering) to drop the
    # last [M, H] HBM intermediate.
    we = jnp.take(params["word_emb"], input_ids.reshape(-1), axis=0)

    out = fused_text_embeddings(
        we, position_ids.reshape(-1), token_type_ids.reshape(-1),
        params["pos_emb"], params["type_emb"], params["ln_g"], params["ln_b"])
    # nn.Dropout(hidden_dropout_prob) is identity in eval mode.
    return out.reshape(B, L, H)


# ----------------------------------------------------------------------------
# Pure-JAX reference (correctness check against the Pallas path)
# ----------------------------------------------------------------------------

def _reference(params, input_ids, position_ids, token_type_ids, eps=1e-12):
    we = jnp.take(params["word_emb"], input_ids, axis=0)
    pe = jnp.take(params["pos_emb"], position_ids, axis=0)
    te = jnp.take(params["type_emb"], token_type_ids, axis=0)
    x = we + pe + te
    mean = jnp.mean(x, axis=-1, keepdims=True)
    var = jnp.mean(jnp.square(x - mean), axis=-1, keepdims=True)
    y = (x - mean) * jax.lax.rsqrt(var + eps)
    return y * params["ln_g"][0] + params["ln_b"][0]


# ----------------------------------------------------------------------------
# Main
# ----------------------------------------------------------------------------

if __name__ == "__main__":
    cfg = dict(
        vocab_size=50,
        hidden_size=32,
        max_position_embeddings=32,
        type_vocab_size=2,
        initializer_range=0.02,
        hidden_dropout_prob=0.1,
    )

    B, L = 2, 8

    key = jax.random.PRNGKey(0)
    kp, k_ids, k_tt = jax.random.split(key, 3)

    params = init_text_embedding_params(kp, cfg)

    input_ids = jax.random.randint(
        k_ids, (B, L), 1, cfg["vocab_size"], dtype=jnp.int32)
    position_ids = jnp.broadcast_to(jnp.arange(L, dtype=jnp.int32), (B, L))
    token_type_ids = jax.random.randint(
        k_tt, (B, L), 0, cfg["type_vocab_size"], dtype=jnp.int32)

    fwd = jax.jit(uniter_text_embeddings)

    # Explicit token_type_ids path.
    out = jax.block_until_ready(fwd(params, input_ids, position_ids, token_type_ids))
    assert out.shape == (B, L, cfg["hidden_size"])
    assert bool(jnp.all(jnp.isfinite(out)))
    ref = _reference(params, input_ids, position_ids, token_type_ids)
    assert bool(jnp.allclose(out, ref, atol=1e-5, rtol=1e-5)), (
        float(jnp.max(jnp.abs(out - ref))))

    # token_type_ids=None default path (equivalent to all-zero type ids).
    out_none = jax.block_until_ready(fwd(params, input_ids, position_ids, None))
    ref_none = _reference(params, input_ids, position_ids,
                          jnp.zeros_like(input_ids))
    assert bool(jnp.allclose(out_none, ref_none, atol=1e-5, rtol=1e-5)), (
        float(jnp.max(jnp.abs(out_none - ref_none))))

    print("KERNEL_OK")
</pallas_src>

<mosaic_0001>
module attributes {stable_mosaic.version = 11 : i64} {
  func.func @_emb_fused_kernel(%arg0: i32, %arg1: memref<16x32xf32, #tpu.memory_space<vmem>>, %arg2: memref<16x1xi32, #tpu.memory_space<vmem>>, %arg3: memref<16x1xi32, #tpu.memory_space<vmem>>, %arg4: memref<32x32xf32, #tpu.memory_space<vmem>>, %arg5: memref<2x32xf32, #tpu.memory_space<vmem>>, %arg6: memref<1x32xf32, #tpu.memory_space<vmem>>, %arg7: memref<1x32xf32, #tpu.memory_space<vmem>>, %arg8: memref<16x32xf32, #tpu.memory_space<vmem>>) attributes {dimension_semantics = [#tpu.dimension_semantics<parallel>], iteration_bounds = array<i64: 1>, scalar_prefetch = 0 : i64, scratch_operands = 0 : i64, tpu.core_type = #tpu.core_type<tc>, window_params = [{transform_indices = @transform_0, window_bounds = array<i64: 16, 32>}, {transform_indices = @transform_1, window_bounds = array<i64: 16, 1>}, {transform_indices = @transform_2, window_bounds = array<i64: 16, 1>}, {pipeline_mode = #tpu.pipeline_mode<synchronous>, transform_indices = @transform_3, window_bounds = array<i64: 32, 32>}, {pipeline_mode = #tpu.pipeline_mode<synchronous>, transform_indices = @transform_4, window_bounds = array<i64: 2, 32>}, {pipeline_mode = #tpu.pipeline_mode<synchronous>, transform_indices = @transform_5, window_bounds = array<i64: 1, 32>}, {pipeline_mode = #tpu.pipeline_mode<synchronous>, transform_indices = @transform_6, window_bounds = array<i64: 1, 32>}, {transform_indices = @transform_7, window_bounds = array<i64: 16, 32>}]} {
    %c0 = arith.constant 0 : index
    %c0_0 = arith.constant 0 : index
    %0 = vector.load %arg1[%c0, %c0_0] : memref<16x32xf32, #tpu.memory_space<vmem>>, vector<16x32xf32>
    %c0_1 = arith.constant 0 : index
    %c0_2 = arith.constant 0 : index
    %1 = vector.load %arg2[%c0_1, %c0_2] : memref<16x1xi32, #tpu.memory_space<vmem>>, vector<16x1xi32>
    %2 = tpu.iota {dimensions = array<i32: 1>} : vector<16x32xi32>
    %3 = vector.broadcast %1 : vector<16x1xi32> to vector<16x32xi32>
    %4 = arith.cmpi eq, %3, %2 : vector<16x32xi32>
    %5 = arith.extui %4 : vector<16x32xi1> to vector<16x32xi32>
    %6 = arith.sitofp %5 : vector<16x32xi32> to vector<16x32xf32>
    %c0_3 = arith.constant 0 : index
    %c0_4 = arith.constant 0 : index
    %7 = vector.load %arg4[%c0_3, %c0_4] : memref<32x32xf32, #tpu.memory_space<vmem>>, vector<32x32xf32>
    %cst = arith.constant dense<0.000000e+00> : vector<16x32xf32>
    %8 = tpu.matmul %6, %7, %cst {dimension_numbers = #tpu.dot_dimension_numbers<[1], [0], [0], [1], [0, 0, 1, 1], [], []>} : vector<16x32xf32>, vector<32x32xf32>, vector<16x32xf32> -> vector<16x32xf32>
    %c0_5 = arith.constant 0 : index
    %c0_6 = arith.constant 0 : index
    %9 = vector.load %arg3[%c0_5, %c0_6] : memref<16x1xi32, #tpu.memory_space<vmem>>, vector<16x1xi32>
    %c0_7 = arith.constant 0 : index
    %c0_8 = arith.constant 0 : index
    %10 = vector.load %arg5[%c0_7, %c0_8] : memref<2x32xf32, #tpu.memory_space<vmem>>, vector<2x32xf32>
    %cst_9 = arith.constant 0.000000e+00 : f32
    %11 = vector.broadcast %cst_9 : f32 to vector<16x32xf32>
    %c0_i32 = arith.constant 0 : i32
    %12 = vector.broadcast %c0_i32 : i32 to vector<16x1xi32>
    %13 = arith.cmpi eq, %9, %12 : vector<16x1xi32>
    %14 = arith.extui %13 : vector<16x1xi1> to vector<16x1xi32>
    %15 = arith.sitofp %14 : vector<16x1xi32> to vector<16x1xf32>
    %16 = vector.extract_strided_slice %10 {offsets = [0, 0], sizes = [1, 32], strides = [1, 1]} : vector<2x32xf32> to vector<1x32xf32>
    %17 = vector.broadcast %15 : vector<16x1xf32> to vector<16x32xf32>
    %18 = vector.broadcast %16 : vector<1x32xf32> to vector<16x32xf32>
    %19 = arith.mulf %17, %18 : vector<16x32xf32>
    %20 = arith.addf %11, %19 : vector<16x32xf32>
    %c1_i32 = arith.constant 1 : i32
    %21 = vector.broadcast %c1_i32 : i32 to vector<16x1xi32>
    %22 = arith.cmpi eq, %9, %21 : vector<16x1xi32>
    %23 = arith.extui %22 : vector<16x1xi1> to vector<16x1xi32>
    %24 = arith.sitofp %23 : vector<16x1xi32> to vector<16x1xf32>
    %25 = vector.extract_strided_slice %10 {offsets = [1, 0], sizes = [1, 32], strides = [1, 1]} : vector<2x32xf32> to vector<1x32xf32>
    %26 = vector.broadcast %24 : vector<16x1xf32> to vector<16x32xf32>
    %27 = vector.broadcast %25 : vector<1x32xf32> to vector<16x32xf32>
    %28 = arith.mulf %26, %27 : vector<16x32xf32>
    %29 = arith.addf %20, %28 : vector<16x32xf32>
    %30 = arith.addf %0, %8 : vector<16x32xf32>
    %31 = arith.addf %30, %29 : vector<16x32xf32>
    %cst_10 = arith.constant dense<0.000000e+00> : vector<16xf32>
    %32 = vector.multi_reduction <add>, %31, %cst_10 [1] : vector<16x32xf32> to vector<16xf32>
    %33 = vector.shape_cast %32 : vector<16xf32> to vector<16x1xf32>
    %cst_11 = arith.constant 3.200000e+01 : f32
    %34 = vector.broadcast %cst_11 : f32 to vector<16x1xf32>
    %35 = arith.divf %33, %34 : vector<16x1xf32>
    %36 = vector.broadcast %35 : vector<16x1xf32> to vector<16x32xf32>
    %37 = arith.subf %31, %36 : vector<16x32xf32>
    %38 = arith.mulf %37, %37 : vector<16x32xf32>
    %cst_12 = arith.constant dense<0.000000e+00> : vector<16xf32>
    %39 = vector.multi_reduction <add>, %38, %cst_12 [1] : vector<16x32xf32> to vector<16xf32>
    %40 = vector.shape_cast %39 : vector<16xf32> to vector<16x1xf32>
    %cst_13 = arith.constant 3.200000e+01 : f32
    %41 = vector.broadcast %cst_13 : f32 to vector<16x1xf32>
    %42 = arith.divf %40, %41 : vector<16x1xf32>
    %cst_14 = arith.constant 9.99999996E-13 : f32
    %43 = vector.broadcast %cst_14 : f32 to vector<16x1xf32>
    %44 = arith.addf %42, %43 : vector<16x1xf32>
    %45 = math.rsqrt %44 : vector<16x1xf32>
    %46 = vector.broadcast %45 : vector<16x1xf32> to vector<16x32xf32>
    %47 = arith.mulf %37, %46 : vector<16x32xf32>
    %c0_15 = arith.constant 0 : index
    %c0_16 = arith.constant 0 : index
    %48 = vector.load %arg6[%c0_15, %c0_16] : memref<1x32xf32, #tpu.memory_space<vmem>>, vector<1x32xf32>
    %49 = vector.broadcast %48 : vector<1x32xf32> to vector<16x32xf32>
    %50 = arith.mulf %47, %49 : vector<16x32xf32>
    %c0_17 = arith.constant 0 : index
    %c0_18 = arith.constant 0 : index
    %51 = vector.load %arg7[%c0_17, %c0_18] : memref<1x32xf32, #tpu.memory_space<vmem>>, vector<1x32xf32>
    %52 = vector.broadcast %51 : vector<1x32xf32> to vector<16x32xf32>
    %53 = arith.addf %50, %52 : vector<16x32xf32>
    %c0_19 = arith.constant 0 : index
    %c0_20 = arith.constant 0 : index
    %54 = vector.load %arg8[%c0_19, %c0_20] : memref<16x32xf32, #tpu.memory_space<vmem>>, vector<16x32xf32>
    tpu.vector_store %arg8[%c0_19, %c0_20], %53 {strides = array<i32>} : memref<16x32xf32, #tpu.memory_space<vmem>>, vector<16x32xf32>,
    return
  }
  func.func @transform_0(%arg0: i32) -> (i32, i32) {
    %c0_i32 = arith.constant 0 : i32
    %c0_i32_0 = arith.constant 0 : i32
    return %arg0, %c0_i32 : i32, i32
  }
  func.func @transform_1(%arg0: i32) -> (i32, i32) {
    %c0_i32 = arith.constant 0 : i32
    %c0_i32_0 = arith.constant 0 : i32
    return %arg0, %c0_i32 : i32, i32
  }
  func.func @transform_2(%arg0: i32) -> (i32, i32) {
    %c0_i32 = arith.constant 0 : i32
    %c0_i32_0 = arith.constant 0 : i32
    return %arg0, %c0_i32 : i32, i32
  }
  func.func @transform_3(%arg0: i32) -> (i32, i32) {
    %c0_i32 = arith.constant 0 : i32
    %c0_i32_0 = arith.constant 0 : i32
    %c0_i32_1 = arith.constant 0 : i32
    return %c0_i32, %c0_i32_0 : i32, i32
  }
  func.func @transform_4(%arg0: i32) -> (i32, i32) {
    %c0_i32 = arith.constant 0 : i32
    %c0_i32_0 = arith.constant 0 : i32
    %c0_i32_1 = arith.constant 0 : i32
    return %c0_i32, %c0_i32_0 : i32, i32
  }
  func.func @transform_5(%arg0: i32) -> (i32, i32) {
    %c0_i32 = arith.constant 0 : i32
    %c0_i32_0 = arith.constant 0 : i32
    %c0_i32_1 = arith.constant 0 : i32
    return %c0_i32, %c0_i32_0 : i32, i32
  }
  func.func @transform_6(%arg0: i32) -> (i32, i32) {
    %c0_i32 = arith.constant 0 : i32
    %c0_i32_0 = arith.constant 0 : i32
    %c0_i32_1 = arith.constant 0 : i32
    return %c0_i32, %c0_i32_0 : i32, i32
  }
  func.func @transform_7(%arg0: i32) -> (i32, i32) {
    %c0_i32 = arith.constant 0 : i32
    %c0_i32_0 = arith.constant 0 : i32
    return %arg0, %c0_i32 : i32, i32
  }
}

</mosaic_0001>

<bundles_post_ra>
// kernel: uniter_text_embeddings.1
= control target key start
LH: loop header
LB: loop body
LE: loop exit
PB: predicated region body
PF: predicated region fallthrough
CT: control target
= control target key end

     0   :  { %v329_v2 = vmov 0   ;;  %s433_s0 = inlined_call_operand.vmem [shape: f32[16,32], index: 0, kind: input, shape index: {}]   ;;  %s434_s1 = inlined_call_operand.vmem [shape: s32[16,1], index: 1, kind: input, shape index: {}]   ;;  %s435_s2 = inlined_call_operand.vmem [shape: s32[16,1], index: 2, kind: input, shape index: {}]   ;;  %s436_s3 = inlined_call_operand.vmem [shape: f32[32,32], index: 3, kind: input, shape index: {}]   ;;  %s437_s4 = inlined_call_operand.vmem [shape: f32[2,32], index: 4, kind: input, shape index: {}]   ;;  %s438_s5 = inlined_call_operand.vmem [shape: f32[1,32], index: 5, kind: input, shape index: {}]   ;;  %s439_s6 = inlined_call_operand.vmem [shape: f32[1,32], index: 6, kind: input, shape index: {}]   ;;  %s440_s7 = inlined_call_operand.hbm [shape: f32[16,32], index: 7, kind: output, shape index: {}]  }
   0x1   :  { %v29_v0 = vld [vmem:[%s434_s1] sm:$0xff]  ;;  %289 = vset.pattern.permute.xlu0 %v329_v2  ;;  %v46_v3 = vld [vmem:[%s436_s3 + $0x8] sm:$0xff]  ;;  %v47_v4 = vld [vmem:[%s436_s3 + $0x10] sm:$0xff]  ;;  %290 = vset.pattern.permute.xlu1 %v329_v2 }
   0x2   :  { %v45_v1 = vld [vmem:[%s436_s3] sm:$0xff]  ;;  %v48_v5 = vld [vmem:[%s436_s3 + $0x18] sm:$0xff]  ;;  %34 = vperm.xlu0 %289, %v29_v0  }
   0x3   :  { %v276_v6 = vpack.c.bf16 %v46_v3, %v45_v1  ;;  %v280_v7 = vpack.c.bf16 %v48_v5, %v47_v4 }
   0x4   :  { %12 = vsyncpa [#allocation3], 0  ;;  %v30_v8 = vld [vmem:[%s434_s1 + $0x8] sm:$0xff]  ;;  %v131_v9 = vld [vmem:[%s435_s2] sm:$0xff]  ;;  %v330_v11 = vmov 0.0   ;;  %v31_v18 = vlaneseq  ;;  %vm49_vm4 = vcmask 261120  }
   0x5   :  { %277 = vmatprep.subr.bf16.mxu0 %v276_v6  ;;  %v132_v10 = vld [vmem:[%s435_s2 + $0x8] sm:$0xff]  ;;  %vm134_vm0 = vcmp.eq.s32.totalorder %v131_v9, 0  ;;  %vm158_vm2 = vcmp.eq.s32.totalorder %v131_v9, 1  ;;  %v133_v28 = vld [vmem:[%s437_s4] sm:$0x3]  ;;  %s331_s22 = smov [#allocation2]  }
   0x6   :  { %279 = vmatpush3.bf16.msra.mxu0 %v276_v6  ;;  %37 = vperm.xlu0 %289, %v30_v8   ;;  %vm135_vm1 = vcmp.eq.s32.totalorder %v132_v10, 0  ;;  %vm159_vm3 = vcmp.eq.s32.totalorder %v132_v10, 1  ;;  %v253_v12 = vsel %vm134_vm0, 1.0, %v330_v11  ;;  %v255_v14 = vsel %vm158_vm2, 1.0, %v330_v11  ;;  %v28_v40 = vld [vmem:[%s433_s0 + $0x8] sm:$0xff]  ;;  %v27_v41 = vld [vmem:[%s433_s0] sm:$0xff] }
   0x7   :  { %281 = vmatprep.subr.bf16.mxu0 %v280_v7  ;;  %v254_v13 = vsel %vm135_vm1, 1.0, %v330_v11  ;;  %v256_v15 = vsel %vm159_vm3, 1.0, %v330_v11  ;;  %v32_v19 = vand.u32 127, %v31_v18  ;;  %v151_v25 = vshrl.u32 %v31_v18, 7  ;;  %v257_v5 = vld [vmem:[%s438_s5] ss:$0 sm:$0xff] }
   0x8   :  { %v291_v16 = vpack.i.bf16 %v254_v13, %v253_v12  ;;  %v296_v17 = vpack.i.bf16 %v256_v15, %v255_v14  ;;  %s238_s23 = sshll.u32 %s331_s22, 4  ;;  %s239_s23 = int_to_ptr.vmem [resolvable:$true] %s238_s23 }
   0x9   :  { %v152_v26 = vsub.s32 0, %v151_v25  ;;  %v176_v27 = vsub.s32 1, %v151_v25  ;;  %s305_s24 = scalar_lea.vmem %s239_s23, 256  ;;  %p310_p1 = scmp.lt.s32.totalorder %s239_s23, %s239_s23 }
   0xa   :  { %283 = vmatpush3.bf16.msra.mxu0 %v280_v7  ;;  %292 = vperm.xlu1 %290, %v291_v16   ;;  %v258_v7 = vld [vmem:[%s439_s6] ss:$0 sm:$0xff]  ;;  %p306_p0 = scmp.ne.s32.totalorder %s239_s23, %s305_s24  ;;  %p311_p2 = scmp.lt.s32.totalorder %s305_s24, %s305_s24 }
   0xb   :  { %v153_v31 = vrot.slane %v133_v28, %v152_v26  ;;  %v177_v33 = vrot.slane %v133_v28, %v176_v27 }
   0xc   :  { %p312_p3 = por %p311_p2, %p310_p1 }
   0xe   :  { %297 = vperm.xlu1 %290, %v296_v17   ;;  %p313_p4 = pnand %p312_p3, %p306_p0 }
  0x81   :  { %v35_v20 = vpop.permute.xlu0 %34 }
  0x82   :  { %vm39_vm5 = vcmp.eq.s32.totalorder %v35_v20, %v32_v19 }
  0x83   :  { %v249_v21 = vsel %vm39_vm5, 1.0, %v330_v11 }
  0x84   :  { %273 = vmatprep.mubr.msk.f32.mxu0 %vm49_vm4, %v249_v21 }
  0x85   :  { %v38_v22 = vpop.permute.xlu0 %37 }
  0x86   :  { %vm40_vm6 = vcmp.eq.s32.totalorder %v38_v22, %v32_v19 }
  0x87   :  { %v250_v23 = vsel %vm40_vm6, 1.0, %v330_v11 }
  0x88   :  { %274 = vmatmul.mubr.msk.f32.vlgmr.msra.gmra.mrb[0].mxu0 %vm49_vm4, %v250_v23 }
  0x89   :  { %v293_v24 = vpop.permute.xlu1 %292 }
  0x8a   :  { %v295_v30 = vunpack.i.h.bf16 %v293_v24  ;;  %v294_v34 = vunpack.i.l.bf16 %v293_v24 }
  0x8c   :  { %v155_v36 = vmul.f32 %v295_v30, %v153_v31  ;;  %v154_v38 = vmul.f32 %v294_v34, %v153_v31 }
  0x8d   :  { %v298_v29 = vpop.permute.xlu1 %297 }
  0x8e   :  { %v300_v32 = vunpack.i.h.bf16 %v298_v29  ;;  %v299_v35 = vunpack.i.l.bf16 %v298_v29 }
  0x90   :  { %v179_v37 = vmul.f32 %v300_v32, %v177_v33  ;;  %v178_v39 = vmul.f32 %v299_v35, %v177_v33 }
  0x92   :  { %v181_v45 = vadd.f32 %v179_v37, %v155_v36  ;;  %v180_v47 = vadd.f32 %v178_v39, %v154_v38 }
 0x15b   :  { %v275_v42 = vpop.f32.mrb[0].mxu0 }
 0x15c   :  { %v183_v43 = vadd.f32 %v275_v42, %v28_v40  ;;  %v122_v44 = vpop.f32.mrb[1].mxu0 }
 0x15d   :  { %v182_v46 = vadd.f32 %v122_v44, %v27_v41 }
 0x15e   :  { %v185_v48 = vadd.f32 %v183_v43, %v181_v45 }
 0x15f   :  { %v184_v49 = vadd.f32 %v182_v46, %v180_v47 }
 0x160   :  { %v189_v50 = vsel %vm49_vm4, %v185_v48, 0.0 }
 0x161   :  { %190 = vadd.xlane.f32.xlu1 %v189_v50  ;;  %v186_v51 = vsel %vm49_vm4, %v184_v49, 0.0 }
 0x162   :  { %187 = vadd.xlane.f32.xlu0 %v186_v51 }
 0x1ee   :  { %v191_v52 = vpop.xlane.xlu1 %190 }
 0x1ef   :  { %v194_v53 = vmul.f32 0.03125, %v191_v52  ;;  %v188_v54 = vpop.xlane.xlu0 %187 }
 0x1f0   :  { %v193_v55 = vmul.f32 0.03125, %v188_v54 }
 0x1f1   :  { %v196_v56 = vsub.f32 %v185_v48, %v194_v53 }
 0x1f2   :  { %v195_v57 = vsub.f32 %v184_v49, %v193_v55 }
 0x1f3   :  { %v198_v60 = vmul.f32 %v196_v56, %v196_v56 }
 0x1f4   :  { %v197_v58 = vmul.f32 %v195_v57, %v195_v57 }
 0x1f5   :  { %v202_v61 = vsel %vm49_vm4, %v198_v60, 0.0 }
 0x1f6   :  { %v199_v59 = vsel %vm49_vm4, %v197_v58, 0.0 }
 0x1f7   :  { %200 = vadd.xlane.f32.xlu0 %v199_v59 }
 0x1fb   :  { %203 = vadd.xlane.f32.xlu0 %v202_v61 }
 0x284   :  { %v201_v62 = vpop.xlane.xlu0 %200 }
 0x285   :  { %v205_v63 = vmul.f32 0.03125, %v201_v62 }
 0x287   :  { %v207_v0 = vadd.f32 1e-12, %v205_v63 }
 0x288   :  { %v204_v1 = vpop.xlane.xlu0 %203 }
 0x289   :  { %301 = vrsqrt.f32 %v207_v0  ;;  %v206_v2 = vmul.f32 0.03125, %v204_v1 }
 0x28b   :  { %v208_v3 = vadd.f32 1e-12, %v206_v2 }
 0x28d   :  { %303 = vrsqrt.f32 %v208_v3 }
 0x293   :  { %v302_v4 = vpop.eup %301 }
 0x294   :  { %v211_v6 = vmul.f32 %v302_v4, %v195_v57 }
 0x296   :  { %v220_v8 = vmul.f32 %v257_v5, %v211_v6 }
 0x297   :  { %v304_v9 = vpop.eup %303 }
 0x298   :  { %v212_v10 = vmul.f32 %v304_v9, %v196_v56  ;;  %v229_v11 = vadd.f32 %v258_v7, %v220_v8 }
 0x29a   :  { %v221_v12 = vmul.f32 %v257_v5, %v212_v10  ;;  %231 = vst.msk [vmem:[#allocation2] sm:$0xff] %vm49_vm4, %v229_v11 }
 0x29c   :  { %v230_v13 = vadd.f32 %v258_v7, %v221_v12 }
 0x29e   :  { %232 = vst.msk [vmem:[#allocation2 + $0x8] sm:$0xff] %vm49_vm4, %v230_v13 }
 0x29f   :  { %316 = shalt.err (!%p313_p4)
}
 0x2a0   :  { %s317_s25 = scalar_lea.hbm %s440_s7, 256 }
 0x2a1   :  { %p318_p5 = scmp.ne.s32.totalorder %s440_s7, %s317_s25  ;;  %p321_p6 = scmp.lt.u32.totalorder %s317_s25, %s440_s7 }
 0x2a3   :  { %p323_p7 = pnand %p321_p6, %p318_p5 }
 0x2a5   :  { %326 = shalt.err (!%p323_p7)
}
 0x2a6   :  { %s332_s30 = smov 128   ;;  %s333_s8 = smov 8  }
 0x2a7   :  { %244 = dma.vmem_to_hbm [thread:$0]  %s239_s23, 256, %s440_s7, [#allocation3], %s332_s30, %s332_s30, %s333_s8  }
 0x2a8   :  { %327 = dma.done.wait [#allocation3], 256  }
 0x2a9   :  { %328 = vsyncadd [#allocation3], 4294967040 }
 0x2aa   :  { %248 = vsyncpa [#allocation3], 1 }

</bundles_post_ra>
